<compile_context>
chip_gen: v7x
topology: tpu7x:2x2x1
jax: 0.10.0
libtpu: 0.0.40
codegen_flags: <defaults>
</compile_context>

<pallas_src>
from functools import partial

import jax
import jax.numpy as jnp
from jax.experimental import pallas as pl
from jax.experimental.pallas import tpu as pltpu


def _patch_embed_kernel(patch_ref, w_ref, pos_ref, out_ref):
    # patch_ref: (TB, Ntot_pad, K) bf16   (row 0 of every image is zeros)
    # w_ref:     (K, td)           bf16   conv weight slice (transposed)
    # pos_ref:   (Ntot_pad, td)    f32    pos + folded bias / cls token
    # out_ref:   (TB, Ntot_pad, td) f32
    tb, ntot_pad, k = patch_ref.shape
    td = w_ref.shape[-1]
    # Merge (TB, Ntot_pad) -> rows: Ntot_pad is a multiple of 16, so the
    # reshape is relayout-free and the matmul is a single aligned 2-D MXU op.
    p = patch_ref[...].reshape(tb * ntot_pad, k)
    emb = jnp.dot(p, w_ref[...], preferred_element_type=jnp.float32)
    emb = emb.reshape(tb, ntot_pad, td) + pos_ref[...][None, :, :]
    out_ref[...] = emb.astype(out_ref.dtype)


def _select_tiles(batch, ntot_pad, k, d):
    """Pick (TB, td, per-step VMEM bytes) under a ~12 MiB working-set budget."""
    budget = 12 * 1024 * 1024

    def step_bytes(tb, td):
        patch = tb * ntot_pad * k * 2          # bf16
        w = k * td * 2                         # bf16
        pos = ntot_pad * td * 4                # f32
        out = tb * ntot_pad * td * 4           # f32
        return 2 * (patch + w + pos + out)     # double-buffered

    # D tile: keep the whole D resident if it fits; else 512/256/128 multiples.
    td = d
    if step_bytes(1, td) > budget:
        for cand in (512, 256, 128):
            if d % cand == 0 and step_bytes(1, cand) <= budget:
                td = cand
                break

    # Batch tile: amortize per-step overhead (target ~512 matmul rows/step).
    target_rows = 512
    divisors = [v for v in range(1, batch + 1) if batch % v == 0]
    tb = max(v for v in divisors if v == 1 or v * ntot_pad <= target_rows)
    while tb > 1 and step_bytes(tb, td) > budget:
        tb = max(v for v in divisors if v < tb)
    # Keep both v7x TensorCores busy when the grid would otherwise be 1 block.
    if d // td == 1 and batch // tb == 1 and batch >= 2:
        tb = max(v for v in divisors if v < tb)

    return tb, td, step_bytes(tb, td)


def _patch_embeddings_forward(img, conv_w, conv_b, cls_token, pos_emb, patch_size):
    """img: (B, C, H, W) f32 (NCHW).  conv_w: (D, C, P, P), conv_b: (D,),
    cls_token: (1, 1, D), pos_emb: (1, N+1, D).  Returns (B, N+1, D) f32."""
    B, C, H, W = img.shape
    P = patch_size
    D = conv_w.shape[0]
    Hp, Wp = H // P, W // P
    N = Hp * Wp
    K = C * P * P
    ntot = N + 1
    ntot_pad = ((ntot + 15) // 16) * 16        # bf16 sublane-aligned rows

    # ---- glue (fused under jit): patches in (C, ph, pw) order, bf16, placed
    # at rows 1..N of a zero buffer (row 0 = cls row, tail rows = pad).
    patches = img.reshape(B, C, Hp, P, Wp, P).transpose(0, 2, 4, 1, 3, 5)
    patches = patches.reshape(B, N, K).astype(jnp.bfloat16)
    patches_aug = jax.lax.dynamic_update_slice(
        jnp.zeros((B, ntot_pad, K), jnp.bfloat16), patches, (0, 1, 0))

    # Conv weight as a bf16 (K, D) matmul operand.
    w_mat = conv_w.reshape(D, K).T.astype(jnp.bfloat16)

    # Fold conv bias (rows 1..N) and cls token (row 0) into the positional
    # table, once, in f32; zero pad rows.
    pos_cls = pos_emb[0, 0:1, :] + cls_token.reshape(1, D)
    pos_rest = pos_emb[0, 1:, :] + conv_b.reshape(1, D)
    pos_aug = jnp.concatenate(
        [pos_cls, pos_rest, jnp.zeros((ntot_pad - ntot, D), pos_emb.dtype)],
        axis=0).astype(jnp.float32)                                # (Ntot_pad, D)

    tb, td, step_bytes = _select_tiles(B, ntot_pad, K, D)
    nd = D // td
    nb = B // tb
    vmem_limit = int(min(32 * 1024 * 1024,
                         max(2 * step_bytes, 8 * 1024 * 1024)))

    grid_spec = pltpu.PrefetchScalarGridSpec(
        num_scalar_prefetch=0,
        grid=(nd, nb),                                  # batch innermost: W/pos resident
        in_specs=[
            pl.BlockSpec((tb, ntot_pad, K), lambda j, b: (b, 0, 0)),   # patches
            pl.BlockSpec((K, td), lambda j, b: (0, j)),                # weight
            pl.BlockSpec((ntot_pad, td), lambda j, b: (0, j)),         # pos(+bias/cls)
        ],
        out_specs=pl.BlockSpec((tb, ntot_pad, td), lambda j, b: (b, 0, j)),
    )

    out = pl.pallas_call(
        _patch_embed_kernel,
        out_shape=jax.ShapeDtypeStruct((B, ntot_pad, D), jnp.float32),
        grid_spec=grid_spec,
        compiler_params=pltpu.CompilerParams(
            dimension_semantics=("parallel", "parallel"),
            vmem_limit_bytes=vmem_limit),
    )(patches_aug, w_mat, pos_aug)

    return out[:, :ntot, :]


patch_embeddings_forward = jax.jit(_patch_embeddings_forward, static_argnums=(5,))


def _reference_forward(img, conv_w, conv_b, cls_token, pos_emb, patch_size):
    # Pure-JAX f32 reference replicating the PyTorch module semantics.
    B = img.shape[0]
    D = conv_w.shape[0]
    x = jax.lax.conv_general_dilated(
        img, conv_w,
        window_strides=(patch_size, patch_size),
        padding="VALID",
        dimension_numbers=("NCHW", "OIHW", "NCHW"),
    ) + conv_b.reshape(1, D, 1, 1)
    B_, D_, Hp, Wp = x.shape
    x = x.reshape(B_, D_, Hp * Wp).transpose(0, 2, 1)              # (B, N, D)
    cls = jnp.broadcast_to(cls_token, (B, 1, D))
    x = jnp.concatenate([cls, x], axis=1)
    return x + pos_emb


if __name__ == "__main__":
    # Small, module-consistent shapes (D=128 keeps the output lane-dense).
    batch = 2
    in_channels = 3
    image_size = 16
    patch_size = 4
    embedding_dim = 128
    num_patches = (image_size // patch_size) ** 2  # 16

    key = jax.random.PRNGKey(0)
    k_img, k_w, k_b, k_cls, k_pos = jax.random.split(key, 5)

    img = jax.random.normal(
        k_img, (batch, in_channels, image_size, image_size), dtype=jnp.float32)
    conv_w = jax.random.normal(
        k_w, (embedding_dim, in_channels, patch_size, patch_size),
        dtype=jnp.float32) * 0.05
    conv_b = jax.random.normal(k_b, (embedding_dim,), dtype=jnp.float32) * 0.05
    cls_token = jax.random.uniform(
        k_cls, (1, 1, embedding_dim), dtype=jnp.float32)
    pos_emb = jax.random.uniform(
        k_pos, (1, num_patches + 1, embedding_dim), dtype=jnp.float32)

    out = patch_embeddings_forward(
        img, conv_w, conv_b, cls_token, pos_emb, patch_size)
    out = jax.block_until_ready(out)

    ref = _reference_forward(img, conv_w, conv_b, cls_token, pos_emb, patch_size)
    assert out.shape == (batch, num_patches + 1, embedding_dim)
    # bf16 matmul operands -> relaxed tolerance vs the f32 reference.
    assert jnp.allclose(out, ref, atol=2e-2, rtol=2e-2)

    print("KERNEL_OK")
</pallas_src>

<mosaic_0001>
module attributes {stable_mosaic.version = 11 : i64} {
  func.func @_patch_embed_kernel(%arg0: i32, %arg1: i32, %arg2: memref<1x32x48xbf16, #tpu.memory_space<vmem>>, %arg3: memref<48x128xbf16, #tpu.memory_space<vmem>>, %arg4: memref<32x128xf32, #tpu.memory_space<vmem>>, %arg5: memref<1x32x128xf32, #tpu.memory_space<vmem>>) attributes {dimension_semantics = [#tpu.dimension_semantics<parallel>, #tpu.dimension_semantics<parallel>], iteration_bounds = array<i64: 1, 2>, scalar_prefetch = 0 : i64, scratch_operands = 0 : i64, tpu.core_type = #tpu.core_type<tc>, window_params = [{transform_indices = @transform_0, window_bounds = array<i64: 1, 32, 48>}, {transform_indices = @transform_1, window_bounds = array<i64: 48, 128>}, {transform_indices = @transform_2, window_bounds = array<i64: 32, 128>}, {transform_indices = @transform_3, window_bounds = array<i64: 1, 32, 128>}]} {
    %c0 = arith.constant 0 : index
    %c0_0 = arith.constant 0 : index
    %c0_1 = arith.constant 0 : index
    %0 = vector.load %arg2[%c0, %c0_0, %c0_1] : memref<1x32x48xbf16, #tpu.memory_space<vmem>>, vector<1x32x48xbf16>
    %1 = vector.shape_cast %0 : vector<1x32x48xbf16> to vector<32x48xbf16>
    %c0_2 = arith.constant 0 : index
    %c0_3 = arith.constant 0 : index
    %2 = vector.load %arg3[%c0_2, %c0_3] : memref<48x128xbf16, #tpu.memory_space<vmem>>, vector<48x128xbf16>
    %cst = arith.constant dense<0.000000e+00> : vector<32x128xf32>
    %3 = tpu.matmul %1, %2, %cst {dimension_numbers = #tpu.dot_dimension_numbers<[1], [0], [0], [1], [0, 0, 1, 1], [], []>} : vector<32x48xbf16>, vector<48x128xbf16>, vector<32x128xf32> -> vector<32x128xf32>
    %4 = vector.shape_cast %3 : vector<32x128xf32> to vector<1x32x128xf32>
    %c0_4 = arith.constant 0 : index
    %c0_5 = arith.constant 0 : index
    %5 = vector.load %arg4[%c0_4, %c0_5] : memref<32x128xf32, #tpu.memory_space<vmem>>, vector<32x128xf32>
    %6 = vector.shape_cast %5 : vector<32x128xf32> to vector<1x32x128xf32>
    %7 = arith.addf %4, %6 : vector<1x32x128xf32>
    %c0_6 = arith.constant 0 : index
    %c0_7 = arith.constant 0 : index
    %c0_8 = arith.constant 0 : index
    %8 = vector.load %arg5[%c0_6, %c0_7, %c0_8] : memref<1x32x128xf32, #tpu.memory_space<vmem>>, vector<1x32x128xf32>
    tpu.vector_store %arg5[%c0_6, %c0_7, %c0_8], %7 {strides = array<i32>} : memref<1x32x128xf32, #tpu.memory_space<vmem>>, vector<1x32x128xf32>,
    return
  }
  func.func @transform_0(%arg0: i32, %arg1: i32) -> (i32, i32, i32) {
    %c0_i32 = arith.constant 0 : i32
    %c0_i32_0 = arith.constant 0 : i32
    %c0_i32_1 = arith.constant 0 : i32
    return %arg1, %c0_i32, %c0_i32_0 : i32, i32, i32
  }
  func.func @transform_1(%arg0: i32, %arg1: i32) -> (i32, i32) {
    %c0_i32 = arith.constant 0 : i32
    %c0_i32_0 = arith.constant 0 : i32
    return %c0_i32, %arg0 : i32, i32
  }
  func.func @transform_2(%arg0: i32, %arg1: i32) -> (i32, i32) {
    %c0_i32 = arith.constant 0 : i32
    %c0_i32_0 = arith.constant 0 : i32
    return %c0_i32, %arg0 : i32, i32
  }
  func.func @transform_3(%arg0: i32, %arg1: i32) -> (i32, i32, i32) {
    %c0_i32 = arith.constant 0 : i32
    %c0_i32_0 = arith.constant 0 : i32
    return %arg1, %c0_i32, %arg0 : i32, i32, i32
  }
}

</mosaic_0001>

<bundles_post_ra>
// kernel: _patch_embeddings_forward.1
= control target key start
LH: loop header
LB: loop body
LE: loop exit
PB: predicated region body
PF: predicated region fallthrough
CT: control target
= control target key end

     0   :  { %s550_s12 = smov 0   ;;  %s552_s13 = smov 0   ;;  %s604_s0 = inlined_call_operand.vmem [shape: bf16[2,32,48], index: 0, kind: input, shape index: {}]   ;;  %s605_s1 = inlined_call_operand.vmem [shape: bf16[48,128], index: 1, kind: input, shape index: {}]   ;;  %s606_s2 = inlined_call_operand.vmem [shape: f32[32,128], index: 2, kind: input, shape index: {}]   ;;  %s607_s3 = inlined_call_operand.vmem [shape: f32[2,32,128], index: 3, kind: output, shape index: {}]  }
   0x1   :  { %s554_s14 = smov 0  }
   0x2 LB: > { %s22_s15 = sadd.s32 1, %s524_s13  ;;  %p446_p0 = scmp.ge.s32.totalorder %s528_s14, 1  ;;  %s528_s14 = sphi %s554_s14, %s13_s14   ;;  %s524_s13 = sphi %s552_s13, %s609_s13   ;;  %s520_s12 = sphi %s550_s12, %s608_s12  }
   0x3   : > { %p23_p1 = scmp.ge.s32.totalorder %s22_s15, 2  ;;  %p169_p2 = scmp.lt.s32.totalorder %s528_s14, 3 }
   0x5   : > { %s611_s15 = smov (%p23_p1, %s22_s15), 0  ;;  %p170_p3 = pnand %p446_p0, %p169_p2 }
   0x6   : > { %v501_v0 = vld [vmem:[%s605_s1] sm:$0xff] (!%p170_p3)   ;;  %p204_p4 = scmp.lt.s32.totalorder (!%p170_p3), %s520_s12, 1  ;;  %v502_v1 = vld [vmem:[%s605_s1 + $0x8] sm:$0xff] (!%p170_p3)   ;;  %v503_v2 = vld [vmem:[%s605_s1 + $0x10] sm:$0xff] (!%p170_p3)   ;;  %vm264_vm0 = vcmask (!%p170_p3), 392192  }
   0x7   : > { %173 = sbr.rel (%p170_p3) target bundleno = 237 (0xed), region = 32  ;;  %467 = vmatprep.subr.bf16.mxu0 (!%p170_p3), %v501_v0  ;;  %v322_v5 = vld [vmem:[%s606_s2 + $0x10] sm:$0xff] (!%p170_p3)  ;;  %v320_v6 = vld [vmem:[%s606_s2] sm:$0xff] (!%p170_p3)  ;;  %v323_v8 = vld [vmem:[%s606_s2 + $0x18] sm:$0xff] (!%p170_p3) }
   0x8   : > { %468 = vmatpush3.bf16.msra.mxu0 (!%p170_p3), %v501_v0  ;;  %v321_v11 = vld [vmem:[%s606_s2 + $0x8] sm:$0xff] (!%p170_p3) }
   0x9   : > { %469 = vmatprep.subr.bf16.mxu0 (!%p170_p3), %v502_v1 }
   0xc   : > { %470 = vmatpush3.bf16.msra.mxu0 (!%p170_p3), %v502_v1 }
   0xd   : > { %471 = vmatprep.subr.bf16.mxu0 (!%p170_p3), %v503_v2 }
   0xe   : > { %s613_s12 = smov (!%p204_p4, %s520_s12), 1 }
   0xf   : > { %s460_s22 = sshll.u32 %s613_s12, 4  ;;  %s461_s26 = sshll.u32 %s613_s12, 5 }
  0x10   : > { %s208_s25 = scalar_lea.vmem %s604_s0, %s460_s22  ;;  %472 = vmatpush3.bf16.msra.mxu0 %v503_v2  ;;  %s224_s6 = scalar_lea.vmem %s607_s3, %s461_s26 }
  0x11   : > { %v504_v3 = vld [vmem:[%s208_s25] sm:$0xff]   ;;  %v505_v4 = vld [vmem:[%s208_s25 + $0x8] sm:$0xff]  }
  0x12   : > { %473 = vmatprep.mubr.msk.bf16.mxu0 %vm264_vm0, %v504_v3 }
  0x13   : > { %474 = vmatmul.mubr.msk.bf16.vlgmr.msra.gmra.mrb[0].mxu0 %vm264_vm0, %v505_v4 }
  0xe6   : > { %v475_v7 = vpop.f32.mrb[0].mxu0 }
  0xe7   : > { %v326_v9 = vadd.f32 %v475_v7, %v322_v5  ;;  %v305_v10 = vpop.f32.mrb[1].mxu0 }
  0xe8   : > { %v324_v12 = vadd.f32 %v320_v6, %v305_v10  ;;  %v476_v13 = vpop.f32.mrb[2].mxu0 }
  0xe9   : > { %330 = vst [vmem:[%s224_s6 + $0x10] sm:$0xff] %v326_v9  ;;  %v327_v14 = vadd.f32 %v476_v13, %v323_v8  ;;  %v308_v15 = vpop.f32.mrb[3].mxu0 }
  0xea   : > { %328 = vst [vmem:[%s224_s6] sm:$0xff] %v324_v12  ;;  %v325_v16 = vadd.f32 %v321_v11, %v308_v15 }
  0xeb   : > { %331 = vst [vmem:[%s224_s6 + $0x18] sm:$0xff] %v327_v14 }
  0xec   : > { %329 = vst [vmem:[%s224_s6 + $0x8] sm:$0xff] %v325_v16 }
  0xed PF: > { %s13_s14 = sadd.s32 1, %s528_s14   ;;  %s608_s12 = smov %s524_s13 }
  0xee   : > { %p10_p5 = scmp.ge.s32.totalorder %s13_s14, 4   ;;  %s609_s13 = smov %s611_s15 }
  0xf0   :  { %12 = sbr.rel (!%p10_p5) target bundleno = 2 (0x2), region = 68 }

</bundles_post_ra>
